<compile_context>
chip_gen: v5e
topology: v5e:2x2
jax: 0.10.0
libtpu: 0.0.40
codegen_flags: <defaults>
</compile_context>

<pallas_src>
import functools

import jax
import jax.numpy as jnp
from jax import lax
from jax.experimental import pallas as pl
from jax.experimental.pallas import tpu as pltpu


def _round_up(a: int, b: int) -> int:
    return (a + b - 1) // b * b


def _make_kernel(s: float, m: float, eps: float, tn: int):
    s = float(s)
    m = float(m)
    eps = float(eps)

    def kernel(x_ref, wt_ref, inv_wn_ref, label_ref, o_ref):
        x = x_ref[...]                                            # (TM, D)

        # MXU matmul in canonical (M,K) x (K,N) layout, f32 accumulation.
        ip = jnp.dot(x, wt_ref[...], preferred_element_type=jnp.float32)  # (TM, TN)

        # Per-row inverse L2 norm of x (computed once per B tile, f32, EUP rsqrt).
        xf = x.astype(jnp.float32)
        inv_xn = lax.rsqrt(jnp.sum(xf * xf, axis=1, keepdims=True) + eps * eps)  # (TM, 1)

        # cosine = ip / (||x|| * ||w||)  via two broadcast multiplies (no divide).
        cosine = ip * inv_xn * inv_wn_ref[...]                     # (TM, TN)

        # Fused one-hot margin: subtract s*m only where column == label.
        labels = label_ref[...]                                    # (TM, 1) int32
        col = pl.program_id(1) * tn + lax.broadcasted_iota(jnp.int32, cosine.shape, 1)
        scaled = s * cosine
        o_ref[...] = jnp.where(col == labels, scaled - (s * m), scaled).astype(o_ref.dtype)

    return kernel


@functools.partial(jax.jit, static_argnames=("s", "m", "eps", "tm", "tn"))
def margin_cosine_product(x, weight, label, *, s=30.0, m=0.4, eps=1e-8,
                          tm=256, tn=512):
    """x: (B, in_features), weight: (out_features, in_features), label: (B,) int
    -> (B, out_features) f32   (CosFace forward, matches the PyTorch module)."""
    B, D = x.shape
    C, D2 = weight.shape
    assert D == D2, "feature dims must match"

    # Tile sizes: TM multiple of 8, TN multiple of 128; shrink for tiny problems.
    tm = min(tm, _round_up(B, 8))
    tn = min(tn, _round_up(C, 128))
    B_pad = _round_up(B, tm)
    C_pad = _round_up(C, tn)

    x_p = jnp.pad(x, ((0, B_pad - B), (0, 0))) if B_pad != B else x
    w_p = jnp.pad(weight, ((0, C_pad - C), (0, 0))) if C_pad != C else weight

    # One-time O(C*D) preprocessing in plain JAX (amortized across all B tiles):
    wt = w_p.T                                                     # (D, C_pad)  (K, N)
    w32 = w_p.astype(jnp.float32)
    inv_wn = lax.rsqrt(jnp.sum(w32 * w32, axis=1) + eps * eps).reshape(1, C_pad)

    label_p = jnp.full((B_pad, 1), -1, dtype=jnp.int32)
    label_p = label_p.at[:B, 0].set(label.astype(jnp.int32))

    grid = (B_pad // tm, C_pad // tn)

    flops = 2 * B_pad * C_pad * D
    bytes_accessed = (
        grid[1] * x_p.size * x_p.dtype.itemsize       # x stream (per C tile)
        + grid[0] * wt.size * wt.dtype.itemsize        # weight stream (per B tile)
        + B_pad * C_pad * 4                            # output
        + grid[0] * inv_wn.size * 4
        + grid[1] * label_p.size * 4
    )

    out = pl.pallas_call(
        _make_kernel(s, m, eps, tn),
        out_shape=jax.ShapeDtypeStruct((B_pad, C_pad), jnp.float32),
        grid_spec=pltpu.PrefetchScalarGridSpec(
            num_scalar_prefetch=0,
            grid=grid,
            in_specs=[
                pl.BlockSpec((tm, D), lambda i, j: (i, 0)),    # x tile
                pl.BlockSpec((D, tn), lambda i, j: (0, j)),    # weight^T tile
                pl.BlockSpec((1, tn), lambda i, j: (0, j)),    # 1/||w|| tile
                pl.BlockSpec((tm, 1), lambda i, j: (i, 0)),    # labels for this B tile
            ],
            out_specs=pl.BlockSpec((tm, tn), lambda i, j: (i, j)),
        ),
        compiler_params=pltpu.CompilerParams(
            dimension_semantics=("parallel", "parallel")),
        cost_estimate=pl.CostEstimate(
            flops=flops,
            transcendentals=B_pad + C_pad,
            bytes_accessed=bytes_accessed),
    )(x_p, wt, inv_wn, label_p)

    return out[:B, :C]


def xavier_uniform(key, out_features, in_features):
    # nn.init.xavier_uniform_ on a (out, in) matrix: fan_in=in, fan_out=out
    bound = (6.0 / (in_features + out_features)) ** 0.5
    return jax.random.uniform(
        key, (out_features, in_features), minval=-bound, maxval=bound,
        dtype=jnp.float32)


if __name__ == "__main__":
    in_features = 32
    out_features = 16
    batch = 8
    s_scale, margin = 30.0, 0.4

    key = jax.random.PRNGKey(0)
    k_w, k_x, k_l = jax.random.split(key, 3)

    weight = xavier_uniform(k_w, out_features, in_features)
    x = jax.random.normal(k_x, (batch, in_features), dtype=jnp.float32)
    label = jax.random.randint(k_l, (batch,), 0, out_features, dtype=jnp.int32)

    out = margin_cosine_product(x, weight, label, s=s_scale, m=margin)
    out = jax.block_until_ready(out)

    # reference check in plain JAX (matches the PyTorch module semantics)
    ip = x @ weight.T
    denom = jnp.maximum(
        jnp.linalg.norm(x, axis=1)[:, None] * jnp.linalg.norm(weight, axis=1)[None, :],
        1e-8)
    cosine = ip / denom
    one_hot = jax.nn.one_hot(label, out_features, dtype=jnp.float32)
    ref = s_scale * (cosine - one_hot * margin)

    assert out.shape == (batch, out_features)
    assert jnp.allclose(out, ref, atol=1e-4, rtol=1e-4), (
        "max abs err = %g" % float(jnp.max(jnp.abs(out - ref))))

    print("KERNEL_OK")
</pallas_src>

<mosaic_0001>
module attributes {stable_mosaic.version = 11 : i64} {
  func.func @kernel(%arg0: i32, %arg1: i32, %arg2: memref<8x32xf32, #tpu.memory_space<vmem>>, %arg3: memref<32x128xf32, #tpu.memory_space<vmem>>, %arg4: memref<1x128xf32, #tpu.memory_space<vmem>>, %arg5: memref<8x1xi32, #tpu.memory_space<vmem>>, %arg6: memref<8x128xf32, #tpu.memory_space<vmem>>) attributes {dimension_semantics = [#tpu.dimension_semantics<parallel>, #tpu.dimension_semantics<parallel>], iteration_bounds = array<i64: 1, 1>, scalar_prefetch = 0 : i64, scratch_operands = 0 : i64, tpu.core_type = #tpu.core_type<tc>, window_params = [{transform_indices = @transform_0, window_bounds = array<i64: 8, 32>}, {transform_indices = @transform_1, window_bounds = array<i64: 32, 128>}, {transform_indices = @transform_2, window_bounds = array<i64: 1, 128>}, {transform_indices = @transform_3, window_bounds = array<i64: 8, 1>}, {transform_indices = @transform_4, window_bounds = array<i64: 8, 128>}]} {
    %c0 = arith.constant 0 : index
    %c0_0 = arith.constant 0 : index
    %0 = vector.load %arg2[%c0, %c0_0] : memref<8x32xf32, #tpu.memory_space<vmem>>, vector<8x32xf32>
    %c0_1 = arith.constant 0 : index
    %c0_2 = arith.constant 0 : index
    %1 = vector.load %arg3[%c0_1, %c0_2] : memref<32x128xf32, #tpu.memory_space<vmem>>, vector<32x128xf32>
    %cst = arith.constant dense<0.000000e+00> : vector<8x128xf32>
    %2 = tpu.matmul %0, %1, %cst {dimension_numbers = #tpu.dot_dimension_numbers<[1], [0], [0], [1], [0, 0, 1, 1], [], []>} : vector<8x32xf32>, vector<32x128xf32>, vector<8x128xf32> -> vector<8x128xf32>
    %3 = arith.mulf %0, %0 : vector<8x32xf32>
    %cst_3 = arith.constant dense<0.000000e+00> : vector<8xf32>
    %4 = vector.multi_reduction <add>, %3, %cst_3 [1] : vector<8x32xf32> to vector<8xf32>
    %5 = vector.shape_cast %4 : vector<8xf32> to vector<8x1xf32>
    %cst_4 = arith.constant 1.000000e-16 : f32
    %6 = vector.broadcast %cst_4 : f32 to vector<8x1xf32>
    %7 = arith.addf %5, %6 : vector<8x1xf32>
    %8 = math.rsqrt %7 : vector<8x1xf32>
    %9 = vector.broadcast %8 : vector<8x1xf32> to vector<8x128xf32>
    %10 = arith.mulf %2, %9 : vector<8x128xf32>
    %c0_5 = arith.constant 0 : index
    %c0_6 = arith.constant 0 : index
    %11 = vector.load %arg4[%c0_5, %c0_6] : memref<1x128xf32, #tpu.memory_space<vmem>>, vector<1x128xf32>
    %12 = vector.broadcast %11 : vector<1x128xf32> to vector<8x128xf32>
    %13 = arith.mulf %10, %12 : vector<8x128xf32>
    %c0_7 = arith.constant 0 : index
    %c0_8 = arith.constant 0 : index
    %14 = vector.load %arg5[%c0_7, %c0_8] : memref<8x1xi32, #tpu.memory_space<vmem>>, vector<8x1xi32>
    %c128_i32 = arith.constant 128 : i32
    %15 = arith.muli %arg1, %c128_i32 : i32
    %16 = tpu.iota {dimensions = array<i32: 1>} : vector<8x128xi32>
    %17 = vector.broadcast %15 : i32 to vector<8x128xi32>
    %18 = arith.addi %17, %16 : vector<8x128xi32>
    %cst_9 = arith.constant 3.000000e+01 : f32
    %19 = vector.broadcast %cst_9 : f32 to vector<8x128xf32>
    %20 = arith.mulf %19, %13 : vector<8x128xf32>
    %21 = vector.broadcast %14 : vector<8x1xi32> to vector<8x128xi32>
    %22 = arith.cmpi eq, %18, %21 : vector<8x128xi32>
    %cst_10 = arith.constant 1.200000e+01 : f32
    %23 = vector.broadcast %cst_10 : f32 to vector<8x128xf32>
    %24 = arith.subf %20, %23 : vector<8x128xf32>
    %25 = arith.select %22, %24, %20 : vector<8x128xi1>, vector<8x128xf32>
    %c0_11 = arith.constant 0 : index
    %c0_12 = arith.constant 0 : index
    %26 = vector.load %arg6[%c0_11, %c0_12] : memref<8x128xf32, #tpu.memory_space<vmem>>, vector<8x128xf32>
    tpu.vector_store %arg6[%c0_11, %c0_12], %25 {strides = array<i32>} : memref<8x128xf32, #tpu.memory_space<vmem>>, vector<8x128xf32>,
    return
  }
  func.func @transform_0(%arg0: i32, %arg1: i32) -> (i32, i32) {
    %c0_i32 = arith.constant 0 : i32
    %c0_i32_0 = arith.constant 0 : i32
    return %arg0, %c0_i32 : i32, i32
  }
  func.func @transform_1(%arg0: i32, %arg1: i32) -> (i32, i32) {
    %c0_i32 = arith.constant 0 : i32
    %c0_i32_0 = arith.constant 0 : i32
    return %c0_i32, %arg1 : i32, i32
  }
  func.func @transform_2(%arg0: i32, %arg1: i32) -> (i32, i32) {
    %c0_i32 = arith.constant 0 : i32
    %c0_i32_0 = arith.constant 0 : i32
    return %c0_i32, %arg1 : i32, i32
  }
  func.func @transform_3(%arg0: i32, %arg1: i32) -> (i32, i32) {
    %c0_i32 = arith.constant 0 : i32
    %c0_i32_0 = arith.constant 0 : i32
    return %arg0, %c0_i32 : i32, i32
  }
  func.func @transform_4(%arg0: i32, %arg1: i32) -> (i32, i32) {
    %c0_i32 = arith.constant 0 : i32
    return %arg0, %arg1 : i32, i32
  }
}

</mosaic_0001>

<bundles_post_ra>
// kernel: margin_cosine_product.1
= control target key start
LH: loop header
LB: loop body
LE: loop exit
PB: predicated region body
PF: predicated region fallthrough
CT: control target
= control target key end

     0   :  { %vm23_vm0 = vcmask 261120   ;;  %v132_v4 = vmov 0   ;;  %s183_s0 = inlined_call_operand.vmem [shape: f32[8,32], index: 0, kind: input, shape index: {}]   ;;  %s184_s1 = inlined_call_operand.vmem [shape: f32[32,128], index: 1, kind: input, shape index: {}]   ;;  %s185_s2 = inlined_call_operand.vmem [shape: f32[1,128], index: 2, kind: input, shape index: {}]   ;;  %s186_s3 = inlined_call_operand.vmem [shape: s32[8,1], index: 3, kind: input, shape index: {}]   ;;  %s187_s4 = inlined_call_operand.hbm [shape: f32[8,128], index: 4, kind: output, shape index: {}]  }
   0x1   :  { %v18_v0 = vld [vmem:[%s183_s0] sm:$0xff]  ;;  %v22_v1 = vld [vmem:[%s184_s1 + $0x18] sm:$0xff]  ;;  %v21_v2 = vld [vmem:[%s184_s1 + $0x10] sm:$0xff]  ;;  %102 = vset.pattern.permute.xlu0 %v132_v4 }
   0x2   :  { %v47_v3 = vmul.f32 %v18_v0, %v18_v0  ;;  %39 = vmatpush.msra.mxu0 %v22_v1  ;;  %v20_v5 = vld [vmem:[%s184_s1 + $0x8] sm:$0xff] }
   0x3   :  { %9 = vsyncpa [#allocation3], 0  ;;  %v19_v7 = vld [vmem:[%s184_s1] sm:$0xff]  ;;  %v70_v18 = vlaneseq  ;;  %s89_s30 = sshll.u32 %s187_s4, 4  ;;  %s90_s30 = int_to_ptr.hbm [resolvable:$true] %s89_s30 }
   0x4   :  { %v48_v6 = vsel %vm23_vm0, %v47_v3, 0.0  ;;  %40 = vmatpush.msra.mxu0 %v21_v2  ;;  %v68_v8 = vld [vmem:[%s186_s3] sm:$0xff]  ;;  %s133_s3 = smov [#allocation2]  }
   0x5   :  { %49 = vadd.xlane.f32.xlu0 %v48_v6  ;;  %v103_v19 = vld [vmem:[%s185_s2] ss:$0 sm:$0xff]  ;;  %v71_v22 = vand.u32 127, %v70_v18  ;;  %s87_s27 = sshll.u32 %s133_s3, 4  ;;  %s88_s27 = int_to_ptr.vmem [resolvable:$true] %s87_s27 }
   0x6   :  { %41 = vmatpush.msra.mxu0 %v20_v5 }
   0x8   :  { %42 = vmatpush.msra.mxu0 %v19_v7 }
   0x9   :  { %98 = vmatmul.msk.f32.vlgmr.msra.gmra.mxu0 %vm23_vm0, %v18_v0 }
  0x19   :  { %76 = vperm.xlu0 %102, %v68_v8  }
  0x78   :  { %v50_v9 = vpop.xlane.xlu0 %49 }
  0x79   :  { %v51_v10 = vadd.f32 1e-16, %v50_v9 }
  0x7b   :  { %104 = vrsqrt.f32 %v51_v10  ;;  %vm58_vm2 = vweird.f32 %v51_v10 }
  0x81   :  { %v105_v11 = vpop.eup %104 }
  0x82   :  { %v53_v12 = vmul.f32 %v105_v11, %v51_v10  ;;  %vm59_vm1 = vweird.f32 %v105_v11 }
  0x83   :  { %vm60_vm3 = vmor %vm58_vm2, %vm59_vm1 }
  0x84   :  { %v54_v13 = vmul.f32 %v105_v11, %v53_v12 }
  0x86   :  { %v55_v14 = vmul.f32 0.5, %v54_v13  ;;  %v44_v16 = vpop.f32.mrf.mxu0 }
  0x88   :  { %v56_v15 = vsub.f32 1.5, %v55_v14 }
  0x8a   :  { %v57_v17 = vmul.f32 %v105_v11, %v56_v15 }
  0x8b   :  { %v77_v24 = vpop.permute.xlu0 %76 }
  0x8c   :  { %v61_v20 = vsel %vm60_vm3, %v105_v11, %v57_v17  ;;  %vm78_vm4 = vcmp.eq.s32.totalorder %v71_v22, %v77_v24 }
  0x8d   :  { %v62_v21 = vmul.f32 %v61_v20, %v44_v16 }
  0x8f   :  { %v67_v23 = vmul.f32 %v103_v19, %v62_v21 }
  0x91   :  { %v74_v25 = vmul.f32 30.0, %v67_v23 }
  0x93   :  { %v99_v26 = vadd.f32 -12.0, %v74_v25 }
  0x95   :  { %v80_v27 = vsel %vm78_vm4, %v99_v26, %v74_v25 }
  0x96   :  { %81 = vst [vmem:[#allocation2] sm:$0xff] %v80_v27 }
  0x97   :  { %92 = dma.vmem_to_hbm [thread:$0]  %s88_s27, 128, %s90_s30, [#allocation3]  }
  0x98   :  { %130 = dma.done.wait [#allocation3], 128  }
  0x99   :  { %131 = vsyncadd [#allocation3], 4294967168 }
  0x9a   :  { %97 = vsyncpa [#allocation3], 1 }

</bundles_post_ra>
